<compile_context>
chip_gen: v6e
topology: v6e:2x2x1
jax: 0.10.0
libtpu: 0.0.40
codegen_flags: <defaults>
</compile_context>

<pallas_src>
import functools

import jax
import jax.numpy as jnp
from jax.experimental import pallas as pl
from jax.experimental.pallas import tpu as pltpu

ALPHA = 0.5
BETA = 0.5
SMOOTH = 1.0

LANES = 128
SUBLANES = 8
MAX_TILE_BYTES = 4 << 20   # per-input DMA tile target (4 MiB)
CHUNK_ROWS = 1024          # rows per in-kernel compute chunk


def _partial_sums_kernel(x_ref, t_ref, st_ref, ssum_ref, tsum_ref, *,
                         chunk_rows, valid_rows_last):
    """Per grid step, emit three (8, 128) partial sums:
       sum(sigmoid(x) * t), sum(sigmoid(x)), sum(t)."""
    tile_rows = x_ref.shape[0]
    ragged = valid_rows_last < tile_rows   # static (trace-time) flag

    st_ref[...] = jnp.zeros_like(st_ref)
    ssum_ref[...] = jnp.zeros_like(ssum_ref)
    tsum_ref[...] = jnp.zeros_like(tsum_ref)

    if ragged:
        i = pl.program_id(0)
        last = pl.num_programs(0) - 1
        # Valid row count for this block; the threshold itself is static.
        limit = jnp.where(i == last, jnp.int32(valid_rows_last),
                          jnp.int32(tile_rows))
    else:
        limit = None

    def accumulate(start, nrows, row_iota):
        xg = x_ref[pl.ds(start, nrows), :].astype(jnp.float32)
        tg = t_ref[pl.ds(start, nrows), :].astype(jnp.float32)
        # sigmoid(x) with a single EUP transcendental (tanh) per vreg.
        sg = 0.5 * jnp.tanh(0.5 * xg) + 0.5
        if ragged:
            keep = row_iota < (limit - start)
            sg = jnp.where(keep, sg, 0.0)
            tg = jnp.where(keep, tg, 0.0)
        groups = nrows // SUBLANES
        # (nrows,128) -> (groups,8,128) is a free re-view of the natural vreg
        # tiling; the axis-0 sum is pure VPU adds (no XLU sublane reduce) and
        # the accumulator stores are full (8,128) vregs.
        st_ref[...] += (sg * tg).reshape(groups, SUBLANES, LANES).sum(axis=0)
        ssum_ref[...] += sg.reshape(groups, SUBLANES, LANES).sum(axis=0)
        tsum_ref[...] += tg.reshape(groups, SUBLANES, LANES).sum(axis=0)

    n_full = tile_rows // chunk_rows
    rem = tile_rows % chunk_rows

    # Hoist the iota out of the loop (JAX does not CSE broadcast_in_dim).
    iota = (jax.lax.broadcasted_iota(jnp.int32, (chunk_rows, LANES), 0)
            if ragged else None)

    def body(g, carry):
        start = pl.multiple_of(g * chunk_rows, chunk_rows)
        accumulate(start, chunk_rows, iota)
        return carry

    jax.lax.fori_loop(0, n_full, body, 0, unroll=n_full <= 8)

    if rem:   # static remainder chunk (only when a single non-1024-multiple block)
        rem_iota = (jax.lax.broadcasted_iota(jnp.int32, (rem, LANES), 0)
                    if ragged else None)
        accumulate(n_full * chunk_rows, rem, rem_iota)


def _sublane_multiple(dtype) -> int:
    # Rows per vreg for the dtype: f32 -> 8, bf16 -> 16, int8/fp8 -> 32.
    return max(SUBLANES, 32 // jnp.dtype(dtype).itemsize)


@jax.jit
def logcosh_tversky_loss(inputs, targets):
    x = jnp.ravel(inputs)
    t = jnp.ravel(targets)
    n = x.shape[0]

    # Sublane-aligned prefix goes through the kernel; the tiny tail (fewer
    # than align elements) is folded in with a plain-JAX epilogue.  No
    # jnp.pad copy, no wrapper upcast.
    align_rows = max(_sublane_multiple(x.dtype), _sublane_multiple(t.dtype))
    align = align_rows * LANES
    n_main = (n // align) * align
    n_tail = n - n_main

    tp = jnp.float32(0.0)
    sum_s = jnp.float32(0.0)
    sum_t = jnp.float32(0.0)

    if n_main:
        rows = n_main // LANES
        x2 = x[:n_main].reshape(rows, LANES)
        t2 = t[:n_main].reshape(rows, LANES)

        itemsize = max(jnp.dtype(x.dtype).itemsize, jnp.dtype(t.dtype).itemsize)
        max_tile_rows = MAX_TILE_BYTES // (LANES * itemsize)   # 8192 for f32
        tile_rows = min(max_tile_rows, rows)
        chunk_rows = min(CHUNK_ROWS, tile_rows)
        grid_n = pl.cdiv(rows, tile_rows)
        valid_rows_last = rows - (grid_n - 1) * tile_rows      # static

        kernel = functools.partial(
            _partial_sums_kernel,
            chunk_rows=chunk_rows,
            valid_rows_last=valid_rows_last,
        )
        part_shape = jax.ShapeDtypeStruct((grid_n * SUBLANES, LANES), jnp.float32)
        part_spec = pl.BlockSpec((SUBLANES, LANES), lambda i: (i, 0))

        st_p, s_p, t_p = pl.pallas_call(
            kernel,
            out_shape=(part_shape, part_shape, part_shape),
            grid_spec=pltpu.PrefetchScalarGridSpec(
                num_scalar_prefetch=0,
                grid=(grid_n,),
                in_specs=[
                    pl.BlockSpec((tile_rows, LANES), lambda i: (i, 0)),
                    pl.BlockSpec((tile_rows, LANES), lambda i: (i, 0)),
                ],
                out_specs=[part_spec, part_spec, part_spec],
            ),
            compiler_params=pltpu.CompilerParams(
                # No carried state -> the grid axis can be sharded across
                # TensorCores on v7x; harmless (1 TC) on v5e/v6e.
                dimension_semantics=("parallel",),
                # Explicit limit: safe on v5e/v6e (128 MiB phys) and v7x
                # (64 MiB phys); covers 2 inputs x 2 buffers x 4 MiB tiles.
                vmem_limit_bytes=40 << 20,
            ),
        )(x2, t2)

        tp = tp + jnp.sum(st_p)
        sum_s = sum_s + jnp.sum(s_p)
        sum_t = sum_t + jnp.sum(t_p)

    if n_tail:
        xt = x[n_main:].astype(jnp.float32)
        tt = t[n_main:].astype(jnp.float32)
        st = jax.nn.sigmoid(xt)
        tp = tp + jnp.sum(st * tt)
        sum_s = sum_s + jnp.sum(st)
        sum_t = sum_t + jnp.sum(tt)

    # Finalize on a handful of scalars in plain JAX.
    fp = sum_s - tp            # == sum((1 - t) * sigmoid(x))
    fn = sum_t - tp            # == sum(t * (1 - sigmoid(x)))
    tversky = (tp + SMOOTH) / (tp + ALPHA * fp + BETA * fn + SMOOTH)
    return jnp.log(jnp.cosh(1.0 - tversky))


def _reference(inputs, targets, alpha=ALPHA, beta=BETA, smooth=SMOOTH):
    x = jax.nn.sigmoid(inputs.astype(jnp.float32)).ravel()
    t = targets.astype(jnp.float32).ravel()
    tp = jnp.sum(x * t)
    fp = jnp.sum((1.0 - t) * x)
    fn = jnp.sum(t * (1.0 - x))
    tv = (tp + smooth) / (tp + alpha * fp + beta * fn + smooth)
    return jnp.log(jnp.cosh(1.0 - tv))


if __name__ == "__main__":
    key = jax.random.PRNGKey(0)
    keys = jax.random.split(key, 8)

    # Primary: NCHW batch=2, channels=4, spatial=16x16 (2048 elements).
    x = jax.random.normal(keys[0], (2, 4, 16, 16), dtype=jnp.float32)
    t = (jax.random.uniform(keys[1], (2, 4, 16, 16)) > 0.5).astype(jnp.float32)
    loss = logcosh_tversky_loss(x, t)
    jax.block_until_ready(loss)
    ref = _reference(x, t)
    assert jnp.allclose(loss, ref, atol=1e-4, rtol=1e-4), (loss, ref)

    # Small ragged size (< one aligned block: exercises the JAX tail epilogue).
    xr = jax.random.normal(keys[2], (2, 3, 7, 9), dtype=jnp.float32)
    tr = (jax.random.uniform(keys[3], (2, 3, 7, 9)) > 0.5).astype(jnp.float32)
    loss_r = logcosh_tversky_loss(xr, tr)
    jax.block_until_ready(loss_r)
    assert jnp.allclose(loss_r, _reference(xr, tr), atol=1e-4, rtol=1e-4), (
        loss_r, _reference(xr, tr))

    # Multi-block grid with a ragged last block (exercises the row mask, the
    # chunked in-kernel fori_loop and the parallel grid): 2*4*320*512 elems.
    xm = jax.random.normal(keys[4], (2, 4, 320, 512), dtype=jnp.float32)
    tm = (jax.random.uniform(keys[5], (2, 4, 320, 512)) > 0.5).astype(jnp.float32)
    loss_m = logcosh_tversky_loss(xm, tm)
    jax.block_until_ready(loss_m)
    assert jnp.allclose(loss_m, _reference(xm, tm), atol=1e-4, rtol=1e-4), (
        loss_m, _reference(xm, tm))

    # bf16 streaming end-to-end (kernel casts to f32 after the load).
    xb = jax.random.normal(keys[6], (2, 4, 32, 32), dtype=jnp.bfloat16)
    tb = (jax.random.uniform(keys[7], (2, 4, 32, 32)) > 0.5).astype(jnp.bfloat16)
    loss_b = logcosh_tversky_loss(xb, tb)
    jax.block_until_ready(loss_b)
    assert jnp.allclose(loss_b, _reference(xb, tb), atol=1e-4, rtol=1e-4), (
        loss_b, _reference(xb, tb))

    print("KERNEL_OK")
</pallas_src>

<mosaic_0001>
module attributes {stable_mosaic.version = 11 : i64} {
  func.func @_partial_sums_kernel(%arg0: i32, %arg1: memref<16x128xf32, #tpu.memory_space<vmem>>, %arg2: memref<16x128xf32, #tpu.memory_space<vmem>>, %arg3: memref<8x128xf32, #tpu.memory_space<vmem>>, %arg4: memref<8x128xf32, #tpu.memory_space<vmem>>, %arg5: memref<8x128xf32, #tpu.memory_space<vmem>>) attributes {dimension_semantics = [#tpu.dimension_semantics<parallel>], iteration_bounds = array<i64: 1>, scalar_prefetch = 0 : i64, scratch_operands = 0 : i64, tpu.core_type = #tpu.core_type<tc>, window_params = [{transform_indices = @transform_0, window_bounds = array<i64: 16, 128>}, {transform_indices = @transform_1, window_bounds = array<i64: 16, 128>}, {transform_indices = @transform_2, window_bounds = array<i64: 8, 128>}, {transform_indices = @transform_3, window_bounds = array<i64: 8, 128>}, {transform_indices = @transform_4, window_bounds = array<i64: 8, 128>}]} {
    %cst = arith.constant 0.000000e+00 : f32
    %0 = vector.broadcast %cst : f32 to vector<8x128xf32>
    %c0 = arith.constant 0 : index
    %c0_0 = arith.constant 0 : index
    %1 = vector.load %arg3[%c0, %c0_0] : memref<8x128xf32, #tpu.memory_space<vmem>>, vector<8x128xf32>
    tpu.vector_store %arg3[%c0, %c0_0], %0 {strides = array<i32>} : memref<8x128xf32, #tpu.memory_space<vmem>>, vector<8x128xf32>,
    %cst_1 = arith.constant 0.000000e+00 : f32
    %2 = vector.broadcast %cst_1 : f32 to vector<8x128xf32>
    %c0_2 = arith.constant 0 : index
    %c0_3 = arith.constant 0 : index
    %3 = vector.load %arg4[%c0_2, %c0_3] : memref<8x128xf32, #tpu.memory_space<vmem>>, vector<8x128xf32>
    tpu.vector_store %arg4[%c0_2, %c0_3], %2 {strides = array<i32>} : memref<8x128xf32, #tpu.memory_space<vmem>>, vector<8x128xf32>,
    %cst_4 = arith.constant 0.000000e+00 : f32
    %4 = vector.broadcast %cst_4 : f32 to vector<8x128xf32>
    %c0_5 = arith.constant 0 : index
    %c0_6 = arith.constant 0 : index
    %5 = vector.load %arg5[%c0_5, %c0_6] : memref<8x128xf32, #tpu.memory_space<vmem>>, vector<8x128xf32>
    tpu.vector_store %arg5[%c0_5, %c0_6], %4 {strides = array<i32>} : memref<8x128xf32, #tpu.memory_space<vmem>>, vector<8x128xf32>,
    %c0_i32 = arith.constant 0 : i32
    %c16_i32 = arith.constant 16 : i32
    %6 = arith.muli %c0_i32, %c16_i32 : i32
    %7 = tpu.assume_multiple %6, 16 : i32
    %8 = arith.index_cast %7 : i32 to index
    %c0_7 = arith.constant 0 : index
    %9 = vector.load %arg1[%8, %c0_7] : memref<16x128xf32, #tpu.memory_space<vmem>>, vector<16x128xf32>
    %10 = arith.index_cast %7 : i32 to index
    %c0_8 = arith.constant 0 : index
    %11 = vector.load %arg2[%10, %c0_8] : memref<16x128xf32, #tpu.memory_space<vmem>>, vector<16x128xf32>
    %cst_9 = arith.constant 5.000000e-01 : f32
    %12 = vector.broadcast %cst_9 : f32 to vector<16x128xf32>
    %13 = arith.mulf %12, %9 : vector<16x128xf32>
    %14 = math.tanh %13 : vector<16x128xf32>
    %cst_10 = arith.constant 5.000000e-01 : f32
    %15 = vector.broadcast %cst_10 : f32 to vector<16x128xf32>
    %16 = arith.mulf %15, %14 : vector<16x128xf32>
    %cst_11 = arith.constant 5.000000e-01 : f32
    %17 = vector.broadcast %cst_11 : f32 to vector<16x128xf32>
    %18 = arith.addf %16, %17 : vector<16x128xf32>
    %c0_12 = arith.constant 0 : index
    %c0_13 = arith.constant 0 : index
    %19 = vector.load %arg3[%c0_12, %c0_13] : memref<8x128xf32, #tpu.memory_space<vmem>>, vector<8x128xf32>
    %20 = arith.mulf %18, %11 : vector<16x128xf32>
    %21 = vector.shape_cast %20 : vector<16x128xf32> to vector<2x8x128xf32>
    %cst_14 = arith.constant dense<0.000000e+00> : vector<8x128xf32>
    %22 = vector.multi_reduction <add>, %21, %cst_14 [0] : vector<2x8x128xf32> to vector<8x128xf32>
    %23 = arith.addf %19, %22 : vector<8x128xf32>
    %c0_15 = arith.constant 0 : index
    %c0_16 = arith.constant 0 : index
    %24 = vector.load %arg3[%c0_15, %c0_16] : memref<8x128xf32, #tpu.memory_space<vmem>>, vector<8x128xf32>
    tpu.vector_store %arg3[%c0_15, %c0_16], %23 {strides = array<i32>} : memref<8x128xf32, #tpu.memory_space<vmem>>, vector<8x128xf32>,
    %c0_17 = arith.constant 0 : index
    %c0_18 = arith.constant 0 : index
    %25 = vector.load %arg4[%c0_17, %c0_18] : memref<8x128xf32, #tpu.memory_space<vmem>>, vector<8x128xf32>
    %26 = vector.shape_cast %18 : vector<16x128xf32> to vector<2x8x128xf32>
    %cst_19 = arith.constant dense<0.000000e+00> : vector<8x128xf32>
    %27 = vector.multi_reduction <add>, %26, %cst_19 [0] : vector<2x8x128xf32> to vector<8x128xf32>
    %28 = arith.addf %25, %27 : vector<8x128xf32>
    %c0_20 = arith.constant 0 : index
    %c0_21 = arith.constant 0 : index
    %29 = vector.load %arg4[%c0_20, %c0_21] : memref<8x128xf32, #tpu.memory_space<vmem>>, vector<8x128xf32>
    tpu.vector_store %arg4[%c0_20, %c0_21], %28 {strides = array<i32>} : memref<8x128xf32, #tpu.memory_space<vmem>>, vector<8x128xf32>,
    %c0_22 = arith.constant 0 : index
    %c0_23 = arith.constant 0 : index
    %30 = vector.load %arg5[%c0_22, %c0_23] : memref<8x128xf32, #tpu.memory_space<vmem>>, vector<8x128xf32>
    %31 = vector.shape_cast %11 : vector<16x128xf32> to vector<2x8x128xf32>
    %cst_24 = arith.constant dense<0.000000e+00> : vector<8x128xf32>
    %32 = vector.multi_reduction <add>, %31, %cst_24 [0] : vector<2x8x128xf32> to vector<8x128xf32>
    %33 = arith.addf %30, %32 : vector<8x128xf32>
    %c0_25 = arith.constant 0 : index
    %c0_26 = arith.constant 0 : index
    %34 = vector.load %arg5[%c0_25, %c0_26] : memref<8x128xf32, #tpu.memory_space<vmem>>, vector<8x128xf32>
    tpu.vector_store %arg5[%c0_25, %c0_26], %33 {strides = array<i32>} : memref<8x128xf32, #tpu.memory_space<vmem>>, vector<8x128xf32>,
    %c1_i32 = arith.constant 1 : i32
    return
  }
  func.func @transform_0(%arg0: i32) -> (i32, i32) {
    %c0_i32 = arith.constant 0 : i32
    %c0_i32_0 = arith.constant 0 : i32
    return %arg0, %c0_i32 : i32, i32
  }
  func.func @transform_1(%arg0: i32) -> (i32, i32) {
    %c0_i32 = arith.constant 0 : i32
    %c0_i32_0 = arith.constant 0 : i32
    return %arg0, %c0_i32 : i32, i32
  }
  func.func @transform_2(%arg0: i32) -> (i32, i32) {
    %c0_i32 = arith.constant 0 : i32
    %c0_i32_0 = arith.constant 0 : i32
    return %arg0, %c0_i32 : i32, i32
  }
  func.func @transform_3(%arg0: i32) -> (i32, i32) {
    %c0_i32 = arith.constant 0 : i32
    %c0_i32_0 = arith.constant 0 : i32
    return %arg0, %c0_i32 : i32, i32
  }
  func.func @transform_4(%arg0: i32) -> (i32, i32) {
    %c0_i32 = arith.constant 0 : i32
    %c0_i32_0 = arith.constant 0 : i32
    return %arg0, %c0_i32 : i32, i32
  }
}

</mosaic_0001>

<bundles_post_ra>
// kernel: logcosh_tversky_loss.1
= control target key start
LH: loop header
LB: loop body
LE: loop exit
PB: predicated region body
PF: predicated region fallthrough
CT: control target
= control target key end

     0   :  { %s106_s0 = inlined_call_operand.vmem [shape: f32[16,128], index: 0, kind: input, shape index: {}]   ;;  %s107_s1 = inlined_call_operand.vmem [shape: f32[16,128], index: 1, kind: input, shape index: {}]   ;;  %s108_s4 = inlined_call_operand.vmem [shape: f32[8,128], index: 4, kind: output, shape index: {2}]   ;;  %s109_s3 = inlined_call_operand.vmem [shape: f32[8,128], index: 3, kind: output, shape index: {1}]   ;;  %s110_s2 = inlined_call_operand.vmem [shape: f32[8,128], index: 2, kind: output, shape index: {0}]  }
   0x1   :  { %v17_v0 = vld [vmem:[%s106_s0] sm:$0xff]  ;;  %v18_v1 = vld [vmem:[%s106_s0 + $0x8] sm:$0xff] }
   0x2   :  { %v19_v2 = vld [vmem:[%s107_s1] sm:$0xff]  ;;  %v20_v3 = vld [vmem:[%s107_s1 + $0x8] sm:$0xff]  ;;  %v21_v4 = vmul.f32 0.5, %v17_v0  ;;  %v22_v5 = vmul.f32 0.5, %v18_v1 }
   0x3   :  { %v40_v6 = vadd.f32 %v20_v3, %v19_v2 }
   0x4   :  { %56 = vtanh.f32 %v21_v4 }
   0x5   :  { %58 = vtanh.f32 %v22_v5  ;;  %42 = vst [vmem:[%s108_s4] sm:$0xff] %v40_v6 }
  0x11   :  { %v57_v7 = vpop.eup %56 }
  0x12   :  { %v59_v8 = vpop.eup %58  ;;  %v25_v9 = vmul.f32 0.5, %v57_v7 }
  0x13   :  { %v26_v10 = vmul.f32 0.5, %v59_v8 }
  0x14   :  { %v27_v11 = vadd.f32 0.5, %v25_v9 }
  0x15   :  { %v28_v12 = vadd.f32 0.5, %v26_v10 }
  0x16   :  { %v30_v13 = vmul.f32 %v27_v11, %v19_v2 }
  0x17   :  { %v31_v14 = vmul.f32 %v28_v12, %v20_v3  ;;  %v36_v15 = vadd.f32 %v28_v12, %v27_v11 }
  0x19   :  { %v32_v16 = vadd.f32 %v31_v14, %v30_v13  ;;  %38 = vst [vmem:[%s109_s3] sm:$0xff] %v36_v15 }
  0x1b   :  { %34 = vst [vmem:[%s110_s2] sm:$0xff] %v32_v16 }

</bundles_post_ra>
